<compile_context>
chip_gen: v7x
topology: tpu7x:2x2x1
jax: 0.10.0
libtpu: 0.0.40
codegen_flags: <defaults>
</compile_context>

<pallas_src>
import functools
import math

import jax
import jax.numpy as jnp
from jax import lax
from jax.experimental import pallas as pl
from jax.experimental.pallas import tpu as pltpu


def _gem_kernel(p_ref, x_ref, o_ref, acc_ref, *,
                eps, n_total, tn, acc_w, n_groups, needs_mask, log_n, p_static):
    # p_ref: SMEM (1,) f32; x_ref: VMEM (1, tc, tn); o_ref: VMEM (1, 1, tc);
    # acc_ref: VMEM (1, tc, acc_w) f32 scratch (persists across the N grid axis).
    k = pl.program_id(2)

    @pl.when(k == 0)
    def _init():
        acc_ref[...] = jnp.zeros_like(acc_ref)

    if p_static is None:
        p_val = p_ref[0]

    def group(g):
        start = g * acc_w
        if not isinstance(start, int):
            start = pl.multiple_of(start, acc_w)
        xg = x_ref[:, :, pl.ds(start, acc_w)].astype(jnp.float32)   # (1, tc, acc_w)
        xg = jnp.maximum(xg, jnp.float32(eps))                      # clamp(min=eps) -> > 0
        if p_static is not None:
            xp = xg
            for _ in range(int(p_static) - 1):                      # VALU-only power
                xp = xp * xg
        else:
            xp = jnp.exp(p_val * jnp.log(xg))                       # x ** p (EUP)
        if needs_mask:
            lane = lax.broadcasted_iota(jnp.int32, xp.shape, 2)
            gidx = k * tn + start + lane                            # global N index
            xp = jnp.where(gidx < n_total, xp, 0.0)
        return xp

    if n_groups == 1:
        partial = group(0)
    else:
        partial = lax.fori_loop(1, n_groups,
                                lambda g, acc: acc + group(g),
                                group(0), unroll=2)

    acc_ref[...] += partial                                         # elementwise (VALU)

    @pl.when(k == pl.num_programs(2) - 1)
    def _finalize():
        s = jnp.sum(acc_ref[...], axis=-1)                          # (1, tc): XLU, once
        if p_static is not None:
            inv_p = jnp.float32(1.0 / float(p_static))
        else:
            inv_p = 1.0 / p_val
        # mean ** (1/p) == exp((log(sum) - log(N)) * (1/p)); log_n is constant.
        res = jnp.exp((jnp.log(s) - log_n) * inv_p)                 # (1, tc)
        o_ref[...] = res[None].astype(o_ref.dtype)                  # (1, 1, tc)


def _vmem_capacity_bytes():
    try:
        return int(pltpu.get_tpu_info().vmem_capacity_bytes)
    except Exception:
        return 64 * 1024 * 1024   # conservative: v7x per-TC VMEM


def _pick_tc(C):
    """C-tile size.  The output block's last dim is tc, so tc must be a
    multiple of 128 or the full C; cap at 128 (sublanes saturate at 8, and
    more C-tiles -> more parallel grid points for megacore / v7x)."""
    if C <= 128:
        return C
    if C % 128 == 0:
        return 128
    return C   # uncommon: full-extent channels keeps all blocks legal


def generalized_mean(x, p, eps=1e-6, p_static=None, block_bytes=None):
    """GeM pooling.  x: (B, C, N); p: scalar parameter.  Returns (B, C) in x.dtype.

    p_static: optional compile-time integer p (classic GeM p=3).  Removes the
    per-element exp/log (EUP-bound at bf16 HBM rates); use when p is frozen.
    """
    B, C, N = x.shape
    itemsize = jnp.dtype(x.dtype).itemsize

    if p_static is not None:
        pv = None
        try:
            pv = float(jnp.asarray(p).reshape(-1)[0])
        except Exception:
            pv = None   # traced p: caller is responsible for keeping p frozen
        if pv is not None and abs(pv - float(p_static)) > 1e-5:
            raise ValueError(f"p_static={p_static} does not match runtime p={pv}")

    tc = _pick_tc(C)

    # x-block budget: ~VMEM/8 (<= 8 MiB) so double-buffered input stays well
    # inside scoped VMEM on every generation (v7x has only 64 MiB physical).
    vmem_cap = _vmem_capacity_bytes()
    budget = block_bytes if block_bytes is not None else min(8 << 20, vmem_cap // 8)

    if N > 128:
        groups_total = -(-N // 128)                  # ceil(N / 128) lane groups
        max_groups = max(1, budget // (tc * 128 * itemsize))
        n_groups = max(1, min(groups_total, max_groups))
        tn = n_groups * 128                          # lane axis: multiple of 128
        acc_w = 128
    else:
        tn = N                                       # full-extent last dim
        n_groups = 1
        acc_w = N
    grid_n = -(-N // tn)
    needs_mask = (N % tn) != 0

    p_arr = jnp.asarray(p, jnp.float32).reshape(1)

    kernel = functools.partial(
        _gem_kernel, eps=float(eps), n_total=N, tn=tn, acc_w=acc_w,
        n_groups=n_groups, needs_mask=needs_mask,
        log_n=float(math.log(N)), p_static=p_static)

    flops_per_elem = 2 + ((int(p_static) - 1) if p_static is not None else 1)
    cost = pl.CostEstimate(
        flops=flops_per_elem * B * C * N,
        transcendentals=(0 if p_static is not None else 2 * B * C * N),
        bytes_accessed=B * C * N * itemsize + B * C * itemsize + 4)

    out3 = pl.pallas_call(
        kernel,
        out_shape=jax.ShapeDtypeStruct((B, 1, C), x.dtype),
        grid=(B, C // tc, grid_n),
        in_specs=[
            pl.BlockSpec(memory_space=pltpu.SMEM),                   # p (scalar)
            pl.BlockSpec((1, tc, tn), lambda b, c, k: (b, c, k)),    # x tile
        ],
        out_specs=pl.BlockSpec((1, 1, tc), lambda b, c, k: (b, 0, c)),
        scratch_shapes=[pltpu.VMEM((1, tc, acc_w), jnp.float32)],
        compiler_params=pltpu.CompilerParams(
            dimension_semantics=("parallel", "parallel", "arbitrary"),
            vmem_limit_bytes=min(vmem_cap // 2, 64 << 20),
        ),
        cost_estimate=cost,
    )(p_arr, x)
    # (B, 1, C) -> (B, C): keeps the in-kernel store lane-dense; reshape is tiny.
    return out3.reshape(B, C)


if __name__ == "__main__":
    key = jax.random.PRNGKey(0)
    eps = 1e-6
    p = jnp.ones((1,), jnp.float32) * 3.0   # nn.Parameter(torch.ones(1) * 3)

    def ref_gem(xx, pv):
        xr = jnp.maximum(xx.astype(jnp.float32), eps) ** pv
        return jnp.mean(xr, axis=2) ** (1.0 / pv)

    # Small shape consistent with the module: (B, C, N) = (2, 8, 16).
    B, C, N = 2, 8, 16
    x = jax.random.uniform(key, (B, C, N), dtype=jnp.float32)
    out = jax.block_until_ready(generalized_mean(x, p, eps=eps))
    ref = ref_gem(x, p[0])
    assert out.shape == (B, C)
    assert jnp.allclose(out, ref, rtol=1e-5, atol=1e-5), (out, ref)

    # Static-p fast path (classic GeM p=3): VALU-only power, no per-element EUP.
    out_s = jax.block_until_ready(generalized_mean(x, p, eps=eps, p_static=3))
    assert jnp.allclose(out_s, ref, rtol=1e-5, atol=1e-5), (out_s, ref)

    # N not a multiple of 128: tail lanes masked (no giant full-N fallback block).
    x2 = jax.random.uniform(jax.random.PRNGKey(1), (2, 8, 200), dtype=jnp.float32)
    out2 = jax.block_until_ready(generalized_mean(x2, p, eps=eps))
    assert jnp.allclose(out2, ref_gem(x2, p[0]), rtol=1e-5, atol=1e-5)
    out2s = jax.block_until_ready(generalized_mean(x2, p, eps=eps, p_static=3))
    assert jnp.allclose(out2s, ref_gem(x2, p[0]), rtol=1e-5, atol=1e-5)

    # Multi-step reduction over the N grid axis (small forced block -> 4 k-steps).
    x3 = jax.random.uniform(jax.random.PRNGKey(2), (2, 8, 512), dtype=jnp.float32)
    out3 = jax.block_until_ready(
        generalized_mean(x3, p, eps=eps, block_bytes=8 * 128 * 4))
    assert jnp.allclose(out3, ref_gem(x3, p[0]), rtol=1e-5, atol=1e-5)

    # bf16 input stays bf16 on the HBM read (half the bytes); upcast in-kernel.
    out_b = jax.block_until_ready(generalized_mean(x.astype(jnp.bfloat16), p, eps=eps))
    assert out_b.dtype == jnp.bfloat16
    assert jnp.allclose(out_b.astype(jnp.float32), ref, rtol=5e-2, atol=5e-2)

    print("KERNEL_OK")
</pallas_src>

<mosaic_0001>
module attributes {stable_mosaic.version = 11 : i64} {
  func.func @_gem_kernel(%arg0: i32, %arg1: i32, %arg2: i32, %arg3: memref<1xf32, #tpu.memory_space<smem>>, %arg4: memref<1x8x16xf32, #tpu.memory_space<vmem>>, %arg5: memref<1x1x8xf32, #tpu.memory_space<vmem>>, %arg6: memref<1x8x16xf32, #tpu.memory_space<vmem>>) attributes {dimension_semantics = [#tpu.dimension_semantics<parallel>, #tpu.dimension_semantics<parallel>, #tpu.dimension_semantics<arbitrary>], iteration_bounds = array<i64: 2, 1, 1>, scalar_prefetch = 0 : i64, scratch_operands = 1 : i64, tpu.core_type = #tpu.core_type<tc>, window_params = [{transform_indices = @transform_0, window_bounds = array<i64: 1>}, {transform_indices = @transform_1, window_bounds = array<i64: 1, 8, 16>}, {transform_indices = @transform_2, window_bounds = array<i64: 1, 1, 8>}]} {
    %c0_i32 = arith.constant 0 : i32
    %0 = arith.cmpi eq, %arg2, %c0_i32 : i32
    %1 = arith.extui %0 : i1 to i32
    %c0_i32_0 = arith.constant 0 : i32
    %2 = arith.cmpi ne, %1, %c0_i32_0 : i32
    scf.if %2 {
      %cst_12 = arith.constant 0.000000e+00 : f32
      %17 = vector.broadcast %cst_12 : f32 to vector<1x8x16xf32>
      %c0_13 = arith.constant 0 : index
      %c0_14 = arith.constant 0 : index
      %c0_15 = arith.constant 0 : index
      %18 = vector.load %arg6[%c0_13, %c0_14, %c0_15] : memref<1x8x16xf32, #tpu.memory_space<vmem>>, vector<1x8x16xf32>
      tpu.vector_store %arg6[%c0_13, %c0_14, %c0_15], %17 {strides = array<i32>} : memref<1x8x16xf32, #tpu.memory_space<vmem>>, vector<1x8x16xf32>,
    } else {
    }
    %c0 = arith.constant 0 : index
    %3 = memref.load %arg3[%c0] : memref<1xf32, #tpu.memory_space<smem>>
    %c0_1 = arith.constant 0 : index
    %c0_2 = arith.constant 0 : index
    %c0_3 = arith.constant 0 : index
    %4 = vector.load %arg4[%c0_1, %c0_2, %c0_3] : memref<1x8x16xf32, #tpu.memory_space<vmem>>, vector<1x8x16xf32>
    %cst = arith.constant 9.99999997E-7 : f32
    %5 = vector.broadcast %cst : f32 to vector<1x8x16xf32>
    %6 = arith.maximumf %4, %5 : vector<1x8x16xf32>
    %7 = math.log %6 : vector<1x8x16xf32>
    %8 = vector.broadcast %3 : f32 to vector<1x8x16xf32>
    %9 = arith.mulf %8, %7 : vector<1x8x16xf32>
    %10 = math.exp %9 : vector<1x8x16xf32>
    %c0_4 = arith.constant 0 : index
    %c0_5 = arith.constant 0 : index
    %c0_6 = arith.constant 0 : index
    %11 = vector.load %arg6[%c0_4, %c0_5, %c0_6] : memref<1x8x16xf32, #tpu.memory_space<vmem>>, vector<1x8x16xf32>
    %12 = arith.addf %11, %10 : vector<1x8x16xf32>
    %c0_7 = arith.constant 0 : index
    %c0_8 = arith.constant 0 : index
    %c0_9 = arith.constant 0 : index
    %13 = vector.load %arg6[%c0_7, %c0_8, %c0_9] : memref<1x8x16xf32, #tpu.memory_space<vmem>>, vector<1x8x16xf32>
    tpu.vector_store %arg6[%c0_7, %c0_8, %c0_9], %12 {strides = array<i32>} : memref<1x8x16xf32, #tpu.memory_space<vmem>>, vector<1x8x16xf32>,
    %c0_i32_10 = arith.constant 0 : i32
    %14 = arith.cmpi eq, %arg2, %c0_i32_10 : i32
    %15 = arith.extui %14 : i1 to i32
    %c0_i32_11 = arith.constant 0 : i32
    %16 = arith.cmpi ne, %15, %c0_i32_11 : i32
    scf.if %16 {
      %c0_12 = arith.constant 0 : index
      %c0_13 = arith.constant 0 : index
      %c0_14 = arith.constant 0 : index
      %17 = vector.load %arg6[%c0_12, %c0_13, %c0_14] : memref<1x8x16xf32, #tpu.memory_space<vmem>>, vector<1x8x16xf32>
      %cst_15 = arith.constant dense<0.000000e+00> : vector<1x8xf32>
      %18 = vector.multi_reduction <add>, %17, %cst_15 [2] : vector<1x8x16xf32> to vector<1x8xf32>
      %cst_16 = arith.constant 1.000000e+00 : f32
      %19 = arith.divf %cst_16, %3 : f32
      %20 = math.log %18 : vector<1x8xf32>
      %cst_17 = arith.constant 2.77258873 : f32
      %21 = vector.broadcast %cst_17 : f32 to vector<1x8xf32>
      %22 = arith.subf %20, %21 : vector<1x8xf32>
      %23 = vector.broadcast %19 : f32 to vector<1x8xf32>
      %24 = arith.mulf %22, %23 : vector<1x8xf32>
      %25 = math.exp %24 : vector<1x8xf32>
      %26 = vector.shape_cast %25 : vector<1x8xf32> to vector<1x1x8xf32>
      %c0_18 = arith.constant 0 : index
      %c0_19 = arith.constant 0 : index
      %c0_20 = arith.constant 0 : index
      %27 = vector.load %arg5[%c0_18, %c0_19, %c0_20] : memref<1x1x8xf32, #tpu.memory_space<vmem>>, vector<1x1x8xf32>
      tpu.vector_store %arg5[%c0_18, %c0_19, %c0_20], %26 {strides = array<i32>} : memref<1x1x8xf32, #tpu.memory_space<vmem>>, vector<1x1x8xf32>,
    } else {
    }
    return
  }
  func.func @transform_0(%arg0: i32, %arg1: i32, %arg2: i32) -> i32 {
    %c0_i32 = arith.constant 0 : i32
    %c0_i32_0 = arith.constant 0 : i32
    return %c0_i32 : i32
  }
  func.func @transform_1(%arg0: i32, %arg1: i32, %arg2: i32) -> (i32, i32, i32) {
    %c0_i32 = arith.constant 0 : i32
    return %arg0, %arg1, %arg2 : i32, i32, i32
  }
  func.func @transform_2(%arg0: i32, %arg1: i32, %arg2: i32) -> (i32, i32, i32) {
    %c0_i32 = arith.constant 0 : i32
    %c0_i32_0 = arith.constant 0 : i32
    return %arg0, %c0_i32, %arg1 : i32, i32, i32
  }
}

</mosaic_0001>

<bundles_post_ra>
// kernel: tpu_custom_call.1
= control target key start
LH: loop header
LB: loop body
LE: loop exit
PB: predicated region body
PF: predicated region fallthrough
CT: control target
= control target key end

     0   :  { %s724_s0 = inlined_call_operand.<no memory space> [shape: f32[1], index: 0, kind: input, shape index: {}]   ;;  %s725_s1 = inlined_call_operand.hbm [shape: f32[2,8,16], index: 1, kind: input, shape index: {}]   ;;  %s726_s2 = inlined_call_operand.hbm [shape: f32[2,1,8], index: 2, kind: output, shape index: {}]  }
   0x1   :  { %7 = sst [smem:[#allocation3]] %s724_s0 }
   0x2   :  { %8 = vsyncpa [#allocation5], 0 }
   0x3   :  { %10 = vsyncpa [#allocation5 + $0x1], 0 }
   0x4   :  { %11 = vsyncpa [#allocation6], 0 }
   0x5   :  { %13 = vsyncpa [#allocation6 + $0x1], 0  ;;  %s548_s11 = smov 0   ;;  %s550_s12 = smov 0  }
   0x6   :  { %s552_s13 = smov 0   ;;  %s554_s14 = smov 0  }
   0x7   :  { %s556_s15 = smov 0   ;;  %s558_s16 = smov 0  }
   0x8 LB: > { %s326_s0 = sadd.s32 4294967295, %s525_s16   ;;  %s327_s17 = sadd.s32 4294967294, %s525_s16   ;;  %s525_s16 = sphi %s558_s16, %s19_s16   ;;  %s521_s15 = sphi %s556_s15, %s742_s15   ;;  %s517_s14 = sphi %s554_s14, %s741_s14   ;;  %s513_s13 = sphi %s552_s13, %s740_s13   ;;  %s509_s12 = sphi %s550_s12, %s739_s12   ;;  %s505_s11 = sphi %s548_s11, %s738_s11  }
   0x9   : > { %s38_s18 = sadd.s32 1, %s521_s15  ;;  %s70_s19 = sadd.s32 1, %s513_s13 }
   0xa   : > { %p40_p0 = scmp.ge.s32.totalorder %s38_s18, 2  ;;  %p77_p1 = scmp.ne.s32.totalorder %s513_s13, %s509_s12 }
   0xb   : > { %p78_p2 = scmp.eq.s32.totalorder %s525_s16, 0  ;;  %p83_p3 = scmp.ne.s32.totalorder %s509_s12, %s505_s11 }
   0xc   : > { %s744_s18 = smov (%p40_p0, %s38_s18), 0  ;;  %p84_p5 = scmp.eq.s32.totalorder %s326_s0, 0 }
   0xd   : > { %p589_p4 = por %p78_p2, %p77_p1  ;;  %s63_s21 = ssub.s32 %s521_s15, %s744_s18 }
   0xe   : > { %p109_p6 = scmp.eq.s32.totalorder %s326_s0, 1  ;;  %p68_p7 = scmp.eq.s32.totalorder %s63_s21, 0 }
   0xf   : > { %p595_p8 = por %p84_p5, %p83_p3  ;;  %p115_p10 = scmp.eq.s32.totalorder %s327_s17, 1 }
  0x10   : > { %p599_p9 = por %p109_p6, %p77_p1  ;;  %p352_p13 = scmp.lt.s32.totalorder %s525_s16, 2 }
  0x11   : > { %s604_s24 = scalar_select %p68_p7, %s513_s13, %s70_s19  }
  0x12   : > { %s730_s23 = scalar_select %p599_p9, 1, 0 }
  0x13   : > { %p606_p11 = por %p115_p10, %p83_p3  ;;  %s138_s26 = sand.u32 1, %s513_s13  }
  0x14   : > { %s330_s27 = sshll.u32 %s138_s26, 3  ;;  %s331_s28 = sshll.u32 %s521_s15, 7 }
  0x15   : > { %s731_s25 = scalar_select %p606_p11, 1, 0 }
  0x16   : > { %s617_s3 = scalar_lea.hbm %s725_s1, %s331_s28  ;;  %s142_s4 = scalar_lea.vmem [#allocation4], %s330_s27 }
  0x17   : > { %s151_s5 = sshll.u32 %s142_s4, 4  ;;  %p623_p0 = pnand %p352_p13, %p589_p4  ;;  %s619_s5 = int_to_ptr.vmem [resolvable:$true] %s151_s5 }
  0x18   : > { %s139_s7 = scalar_lea.sflag [#allocation5], %s138_s26  ;;  %s413_s8 = scalar_lea.hbm %s617_s3, 128 }
  0x19   : > { %p414_p3 = scmp.ne.s32.totalorder %s617_s3, %s413_s8  ;;  %p415_p5 = pneg %p623_p0 }
  0x1a   : > { %s418_s0 = scalar_lea.hbm %s725_s1, 256  ;;  %p419_p4 = scmp.lt.u32.totalorder %s617_s3, %s725_s1 }
  0x1b   : > { %p416_p6 = pnand %p415_p5, %p414_p3  ;;  %p420_p10 = scmp.lt.u32.totalorder %s418_s0, %s413_s8 }
  0x1c   : > { %p422_p12 = scmp.lt.u32.totalorder %s413_s8, %s617_s3 }
  0x1d   : > { %p417_p7 = pneg %p416_p6  ;;  %p421_p13 = por %p420_p10, %p419_p4 }
  0x1f   : > { %p423_p1 = por %p422_p12, %p421_p13 }
  0x21   : > { %p424_p2 = pnand %p423_p1, %p417_p7 }
  0x23   : > { %427 = shalt.err (!%p424_p2)
}
  0x24   : > { %s428_s20 = scalar_lea.vmem %s619_s5, 128  ;;  %s527_s21 = smov [#allocation4]  }
  0x25   : > { %p429_p3 = scmp.ne.s32.totalorder %s619_s5, %s428_s20  ;;  %s433_s26 = sshll.u32 %s527_s21, 4  ;;  %s434_s26 = int_to_ptr.vmem [resolvable:$false] %s433_s26 }
  0x26   : > { %s435_s27 = scalar_lea.vmem %s434_s26, 256  ;;  %p436_p9 = scmp.lt.s32.totalorder %s619_s5, %s434_s26 }
  0x27   : > { %p431_p6 = pnand %p429_p3, %p415_p5  ;;  %p437_p4 = scmp.lt.s32.totalorder %s435_s27, %s428_s20 }
  0x29   : > { %p432_p11 = pneg %p431_p6  ;;  %p438_p10 = por %p437_p4, %p436_p9 }
  0x2b   : > { %p439_p12 = pnand %p438_p10, %p432_p11 }
  0x2d   : > { %442 = shalt.err (!%p439_p12)
}
  0x2e   : > { %347 = dma.hbm_to_vmem [thread:$0]  (!%p623_p0), %s617_s3, 128, %s619_s5, %s139_s7  }
  0x2f   : > { %p733_p1 = scmp.lt.s32.totalorder %s525_s16, 3  ;;  %p734_p2 = scmp.ge.s32.totalorder %s525_s16, 1 }
  0x31   : > { %p157_p5 = pnand %p734_p2, %p733_p1 }
  0x32   : > { %s659_s28 = sand.u32 (!%p157_p5), 1, %s509_s12  }
  0x33   : > { %160 = sbr.rel (%p157_p5) target bundleno = 294 (0x126), region = 28  ;;  %s333_s29 = sshll.u32 (!%p157_p5), %s659_s28, 3 }
  0x34   : > { %s163_s30 = scalar_lea.sflag (!%p157_p5), [#allocation5], %s659_s28  ;;  %s166_s4 = scalar_lea.vmem (!%p157_p5), [#allocation4], %s333_s29 }
  0x3a   : > { %496 = dma.done.wait (%p595_p8), %s163_s30, 128  }
  0x3b   : > { %498 = vsyncadd (%p595_p8), %s163_s30, 4294967168  ;;  %vm190_vm0 = vcmask 130048   ;;  %s192_s3 = sld [smem:[#allocation3]]  ;;  %v528_v0 = vmov 0.0   ;;  %v193_v1 = vld [vmem:[%s166_s4] sm:$0xff]  ;;  %v223_v21 = vlaneseq  ;;  %s335_s5 = sshll.u32 %s517_s14, 4 }
  0x3c   : > { %191 = vst.msk [vmem:[#allocation2] sm:$0xff] %vm190_vm0, %v528_v0  ;;  %v194_v3 = vmax.f32 %v193_v1, 1e-06  ;;  %s185_s6 = scalar_lea.vmem [#allocation7], %s659_s28  ;;  %vm230_vm1 = vcmask 57344   ;;  %s675_s10 = scalar_lea.hbm %s726_s2, %s335_s5 }
  0x3d   : > { %v224_v22 = vand.u32 127, %v223_v21  ;;  %v226_v23 = vshrl.u32 %v223_v21, 7  ;;  %s246_s7 = sshll.u32 %s185_s6, 4  ;;  %s233_s0 = scalar_lea.sflag [#allocation6], %s659_s28  ;;  %s677_s7 = int_to_ptr.vmem [resolvable:$true] %s246_s7 }
  0x3e   : > { %s443_s17 = scalar_lea.vmem %s677_s7, 16  ;;  %p735_p9 = scmp.ne.s32.totalorder %s730_s23, 0 }
  0x3f   : > { %v227_v24 = vsub.s32 %v224_v22, %v226_v23  ;;  %p444_p8 = scmp.ne.s32.totalorder %s677_s7, %s443_s17  ;;  %s529_s14 = smov [#allocation7]  }
  0x40   : > { %s447_s19 = sshll.u32 %s529_s14, 4  ;;  %s448_s19 = int_to_ptr.vmem [resolvable:$false] %s447_s19 }
  0x41   : > { %v197_v2 = vstv %s192_s3  ;;  %p445_p11 = pnand %p444_p8, %p735_p9  ;;  %s449_s20 = scalar_lea.vmem %s448_s19, 32 }
  0x42   : > { %403 = vrcp.f32 %v197_v2  ;;  %p450_p7 = scmp.lt.s32.totalorder %s677_s7, %s448_s19  ;;  %p451_p13 = scmp.lt.s32.totalorder %s449_s20, %s443_s17 }
  0x43   : > { %405 = vlog2.f32 %v194_v3  ;;  %v201_v9 = vld [vmem:[#allocation2] sm:$0xff]  ;;  %p446_p0 = pneg %p445_p11 }
  0x44   : > { %p452_p3 = por %p451_p13, %p450_p7 }
  0x46   : > { %p453_p6 = pnand %p452_p3, %p446_p0 }
  0x4c   : > { %v404_v4 = vpop.eup %403 }
  0x4d   : > { %338 = vpush %v404_v4  ;;  %v406_v5 = vpop.eup %405 }
  0x4e   : > { %v196_v6 = vmul.f32 0.6931472, %v406_v5 }
  0x50   : > { %v198_v7 = vmul.f32 %v197_v2, %v196_v6 }
  0x52   : > { %v199_v8 = vmul.f32 1.442695, %v198_v7 }
  0x54   : > { %407 = vpow2.f32 %v199_v8 }
  0x5e   : > { %v408_v10 = vpop.eup %407 }
  0x5f   : > { %v202_v11 = vadd.f32 %v408_v10, %v201_v9 }
  0x61   : > { %204 = vst.msk [vmem:[#allocation2] sm:$0xff] %vm190_vm0, %v202_v11 }
  0x68   : > { %v208_v12 = vld [vmem:[#allocation2] sm:$0xff] }
  0x69   : > { %v209_v13 = vsel %vm190_vm0, %v208_v12, 0.0 }
  0x6a   : > { %210 = vadd.xlane.f32.xlu0 %v209_v13 }
  0x7e   : > { %s339_s22 = spop %338 }
  0x7f   : > { %v218_v17 = vstv %s339_s22 }
  0xf7   : > { %v211_v14 = vpop.xlane.xlu0 %210 }
  0xf8   : > { %409 = vlog2.f32 %v211_v14 }
 0x102   : > { %v410_v15 = vpop.eup %409 }
 0x103   : > { %v216_v16 = vmul.f32 0.6931472, %v410_v15 }
 0x105   : > { %v334_v18 = vadd.f32 -2.7725887, %v216_v16 }
 0x107   : > { %v219_v19 = vmul.f32 %v334_v18, %v218_v17 }
 0x109   : > { %v220_v20 = vmul.f32 1.442695, %v219_v19 }
 0x10b   : > { %411 = vpow2.f32 %v220_v20 }
 0x115   : > { %v412_v25 = vpop.eup %411 }
 0x116   : > { %v228_v26 = vrot.slane %v412_v25, %v227_v24 }
 0x118   : > { %231 = vst.msk [vmem:[%s185_s6] sm:$0x1] %vm230_vm1, %v228_v26 }
 0x119   : > { %456 = shalt.err (!%p453_p6)
}
 0x11a   : > { %s457_s21 = scalar_lea.hbm %s675_s10, 16  ;;  %s461_s28 = scalar_lea.hbm %s726_s2, 32 }
 0x11b   : > { %p458_p4 = scmp.ne.s32.totalorder %s675_s10, %s457_s21  ;;  %p462_p1 = scmp.lt.u32.totalorder %s675_s10, %s726_s2 }
 0x11c   : > { %p463_p2 = scmp.lt.u32.totalorder %s461_s28, %s457_s21  ;;  %p465_p8 = scmp.lt.u32.totalorder %s457_s21, %s675_s10 }
 0x11d   : > { %p459_p10 = pnand %p458_p4, %p735_p9 }
 0x11e   : > { %p464_p5 = por %p463_p2, %p462_p1 }
 0x11f   : > { %p460_p12 = pneg %p459_p10 }
 0x120   : > { %p466_p11 = por %p465_p8, %p464_p5 }
 0x122   : > { %p467_p0 = pnand %p466_p11, %p460_p12 }
 0x124   : > { %470 = shalt.err (!%p467_p0)
}
 0x125   : > { %342 = dma.vmem_to_hbm [thread:$0]  (%p735_p9), %s677_s7, 16, %s675_s10, %s233_s0  }
 0x126 PF: > { %s258_s4 = sand.u32 1, %s505_s11   ;;  %p736_p7 = scmp.ne.s32.totalorder %s731_s25, 0 }
 0x127   : > { %p737_p13 = scmp.ge.s32.totalorder %s525_s16, 2  ;;  %s259_s3 = scalar_lea.sflag [#allocation6], %s258_s4 }
 0x129   : > { %p349_p3 = pnand %p737_p13, %p736_p7 }
 0x12b   : > { %500 = dma.done.wait (!%p349_p3), %s259_s3, 16  }
 0x12c   : > { %502 = vsyncadd (!%p349_p3), %s259_s3, 4294967280  ;;  %s19_s16 = sadd.s32 1, %s525_s16   ;;  %s738_s11 = smov %s509_s12 }
 0x12d   : > { %p16_p6 = scmp.ge.s32.totalorder %s19_s16, 4   ;;  %s739_s12 = smov %s513_s13 }
 0x12e   : > { %s740_s13 = smov %s604_s24  ;;  %s741_s14 = smov %s521_s15 }
 0x12f   : > { %s742_s15 = smov %s744_s18  ;;  %18 = sbr.rel (!%p16_p6) target bundleno = 8 (0x8), region = 81 }
 0x136   :  { %263 = vsyncpa [#allocation5], 1 }
 0x137   :  { %265 = vsyncpa [#allocation5 + $0x1], 1 }
 0x138   :  { %266 = vsyncpa [#allocation6], 1 }
 0x139   :  { %268 = vsyncpa [#allocation6 + $0x1], 1 }

</bundles_post_ra>
